<compile_context>
chip_gen: v5e
topology: v5e:2x2
jax: 0.10.0
libtpu: 0.0.40
codegen_flags: <defaults>
</compile_context>

<pallas_src>
import functools

import numpy as np
import jax
import jax.numpy as jnp
from jax.experimental import pallas as pl
from jax.experimental.pallas import tpu as pltpu


# ------------------------- head-view selector constants -------------------- #

def _head_view_selectors(B, L, D, H):
    """Constant 0/1 matrices encoding the raw `.view(B*H, L, dh)` grouping.

    The torch module reshapes [B, L, D] -> [B*H, L, dh] WITHOUT a head
    transpose, so (requiring H | L) head h of batch b owns rows
    [b*L + h*L//H, b*L + (h+1)*L//H) of the (B*L, D) slab, carved row-major
    into L blocks of width dh.  These selectors let the kernel do every
    head-grouped reduction as a lane-dense matmul (no dh-on-lanes layout).
    """
    dh, Lr, BL = D // H, L // H, B * L
    c = np.arange(D)
    r = np.arange(BL)
    cf = (c[:, None] % dh == c[None, :] % dh).astype(np.float32)            # (D, D)
    fold = (c[:, None] // dh == np.arange(H)[None, :]).astype(np.float32)   # (D, H)
    expand = np.ascontiguousarray(fold.T)                                   # (H, D)
    hs = (r[:, None] // Lr == r[None, :] // Lr).astype(np.float32)          # (BL, BL)
    hcm = ((r[:, None] // Lr) % H == c[None, :] // dh).astype(np.float32)   # (BL, D)
    bsel = (np.arange(B)[:, None] == r[None, :] // L).astype(np.float32)    # (B, BL)
    return tuple(jnp.asarray(a) for a in (cf, fold, expand, hs, hcm, bsel))


# ----------------------------- fused kernel -------------------------------- #

def fused_mha_kernel(x_ref, wq_ref, bq_ref, wk_ref, bk_ref, wv_ref, bv_ref,
                     wo_ref, bo_ref, gamma_ref, beta_ref,
                     cf_ref, fold_ref, expand_ref, hs_ref, hcm_ref, bsel_ref,
                     o_ref, *, scale):
    f32 = jnp.float32
    dot = lambda a, b: jnp.dot(a, b, preferred_element_type=f32)

    x2 = x_ref[...]                                        # (B*L, D), D on lanes

    # --- QKV projection, fused in-kernel (never round-trips through HBM) ---
    q2 = dot(x2, wq_ref[...]) + bq_ref[...]                # (B*L, D)
    k2 = dot(x2, wk_ref[...]) + bk_ref[...]
    v2 = dot(x2, wv_ref[...]) + bv_ref[...]

    hs = hs_ref[...]                                       # (B*L, B*L) same-head mask
    cf = cf_ref[...]                                       # (D, D) same within-block offset

    # k-sum identity: sum_j q_i.k_j == q_i.(sum_j k_j)  -> no (L, L) score matrix.
    # ks_full[r, c] = (per-head sum of K)[head(r), c % dh], laid out lane-dense.
    ks_full = dot(dot(hs, k2), cf)                         # (B*L, D)
    logits = dot(q2 * ks_full, fold_ref[...]) * scale      # (B*L, H): one logit per raw-view block

    # Per-head softmax over each head's (L//H, H) block of `logits`.
    # softmax is shift-invariant, so a single global max is exact and avoids a
    # cross-sublane segmented max; magnitudes here make underflow a non-issue.
    m = jnp.max(logits, keepdims=True)
    e = jnp.exp(logits - m)
    denom = dot(hs, jnp.sum(e, axis=-1, keepdims=True))    # (B*L, 1) per-head partition sums
    p = e / denom                                          # (B*L, H) block probabilities
    # (exact divide; pl.reciprocal(approx=True) rel-err ~2^-12 strains the 1e-4 check)

    # Context, assembled straight into the (B, D) raw view (heads on lane blocks).
    pv = dot(p, expand_ref[...]) * v2                      # (B*L, D)
    ctx = dot(bsel_ref[...], dot(pv, cf) * hcm_ref[...])   # (B, D)

    # Output projection (single dot for all batches) + Dropout(p=0)=id + LayerNorm.
    y = dot(ctx, wo_ref[...]) + bo_ref[...]                # (B, D)
    mean = jnp.mean(y, axis=-1, keepdims=True)
    var = jnp.mean((y - mean) ** 2, axis=-1, keepdims=True)
    yn = (y - mean) * jax.lax.rsqrt(var + 1e-5)
    o_ref[:, 0, :] = yn * gamma_ref[...] + beta_ref[...]   # one batched store


# ----------------------------- wrapper ------------------------------------- #

def multi_head_attention(x, params, num_head):
    B, L, D = x.shape
    H = num_head
    assert D % H == 0, "dim_model must be divisible by num_head"
    if L % H != 0:
        # TODO(synk): general L (raw-view head blocks straddle rows) needs an
        # in-kernel gather/relayout path; not needed for the shapes used here.
        raise NotImplementedError("kernel requires num_head to divide seq_len")
    dh = D // H
    wq_t, bq, wk_t, bk, wv_t, bv, wo_t, bo, gamma, beta = params

    selectors = _head_view_selectors(B, L, D, H)
    x2d = x.reshape(B * L, D)          # free reshape; feature dim stays on lanes

    args = (x2d, wq_t, bq, wk_t, bk, wv_t, bv, wo_t, bo, gamma, beta) + selectors
    vmem = pl.BlockSpec(memory_space=pltpu.MemorySpace.VMEM)

    # Single invocation, everything resident in VMEM (a few tens of KB): at these
    # shapes any grid is pure per-step overhead, and one launch replaces the
    # previous two launches + HBM qkv round-trip.
    return pl.pallas_call(
        functools.partial(fused_mha_kernel, scale=float(dh) ** -0.5),
        out_shape=jax.ShapeDtypeStruct((B, 1, D), jnp.float32),
        in_specs=[vmem] * len(args),
        out_specs=vmem,
    )(*args)


# --------------------------- pure-JAX reference ---------------------------- #

def reference(x, params, num_head):
    B, L, D = x.shape
    dh = D // num_head
    wq_t, bq, wk_t, bk, wv_t, bv, wo_t, bo, gamma, beta = params
    Q = x @ wq_t + bq
    K = x @ wk_t + bk
    V = x @ wv_t + bv
    Qh = Q.reshape(B * num_head, L, dh)
    Kh = K.reshape(B * num_head, L, dh)
    Vh = V.reshape(B * num_head, L, dh)
    s = jnp.einsum("bqd,bkd->bqk", Qh, Kh) * (dh ** -0.5)
    a = jnp.sum(s, axis=-1)                       # [BH, L]
    p = jax.nn.softmax(a, axis=-1)[:, None, :]    # [BH, 1, L]
    ctx = jnp.einsum("bql,bld->bqd", p, Vh)       # [BH, 1, dh]
    ctx = ctx.reshape(B, 1, D)
    y = ctx @ wo_t + bo
    mean = jnp.mean(y, axis=-1, keepdims=True)
    var = jnp.mean((y - mean) ** 2, axis=-1, keepdims=True)
    return (y - mean) / jnp.sqrt(var + 1e-5) * gamma + beta


# ------------------------------- main -------------------------------------- #

if __name__ == "__main__":
    B, L, D, H = 2, 8, 32, 4            # batch, seq, dim_model, num_head

    key = jax.random.PRNGKey(0)
    ks = jax.random.split(key, 10)
    bound = 1.0 / (D ** 0.5)

    def lin(kw, kb):
        # nn.Linear-style init; weight stored pre-transposed as (in, out)
        w_t = jax.random.uniform(kw, (D, D), jnp.float32, -bound, bound)
        b = jax.random.uniform(kb, (1, D), jnp.float32, -bound, bound)
        return w_t, b

    wq_t, bq = lin(ks[0], ks[1])
    wk_t, bk = lin(ks[2], ks[3])
    wv_t, bv = lin(ks[4], ks[5])
    wo_t, bo = lin(ks[6], ks[7])
    gamma = jnp.ones((1, D), jnp.float32)
    beta = jnp.zeros((1, D), jnp.float32)
    params = (wq_t, bq, wk_t, bk, wv_t, bv, wo_t, bo, gamma, beta)

    x = jax.random.normal(ks[8], (B, L, D), jnp.float32)

    mha = jax.jit(functools.partial(multi_head_attention, num_head=H))
    out = jax.block_until_ready(mha(x, params))

    ref = reference(x, params, H)
    assert out.shape == (B, 1, D)
    assert jnp.allclose(out, ref, atol=1e-4, rtol=1e-4)

    print("KERNEL_OK")
</pallas_src>

<mosaic_0001>
module attributes {stable_mosaic.version = 11 : i64} {
  func.func @fused_mha_kernel(%arg0: memref<16x32xf32, #tpu.memory_space<vmem>>, %arg1: memref<32x32xf32, #tpu.memory_space<vmem>>, %arg2: memref<1x32xf32, #tpu.memory_space<vmem>>, %arg3: memref<32x32xf32, #tpu.memory_space<vmem>>, %arg4: memref<1x32xf32, #tpu.memory_space<vmem>>, %arg5: memref<32x32xf32, #tpu.memory_space<vmem>>, %arg6: memref<1x32xf32, #tpu.memory_space<vmem>>, %arg7: memref<32x32xf32, #tpu.memory_space<vmem>>, %arg8: memref<1x32xf32, #tpu.memory_space<vmem>>, %arg9: memref<1x32xf32, #tpu.memory_space<vmem>>, %arg10: memref<1x32xf32, #tpu.memory_space<vmem>>, %arg11: memref<32x32xf32, #tpu.memory_space<vmem>>, %arg12: memref<32x4xf32, #tpu.memory_space<vmem>>, %arg13: memref<4x32xf32, #tpu.memory_space<vmem>>, %arg14: memref<16x16xf32, #tpu.memory_space<vmem>>, %arg15: memref<16x32xf32, #tpu.memory_space<vmem>>, %arg16: memref<2x16xf32, #tpu.memory_space<vmem>>, %arg17: memref<2x1x32xf32, #tpu.memory_space<vmem>>) attributes {dimension_semantics = [], scalar_prefetch = 0 : i64, scratch_operands = 0 : i64, tpu.core_type = #tpu.core_type<tc>} {
    %c0 = arith.constant 0 : index
    %c0_0 = arith.constant 0 : index
    %0 = vector.load %arg0[%c0, %c0_0] : memref<16x32xf32, #tpu.memory_space<vmem>>, vector<16x32xf32>
    %c0_1 = arith.constant 0 : index
    %c0_2 = arith.constant 0 : index
    %1 = vector.load %arg1[%c0_1, %c0_2] : memref<32x32xf32, #tpu.memory_space<vmem>>, vector<32x32xf32>
    %cst = arith.constant dense<0.000000e+00> : vector<16x32xf32>
    %2 = tpu.matmul %0, %1, %cst {dimension_numbers = #tpu.dot_dimension_numbers<[1], [0], [0], [1], [0, 0, 1, 1], [], []>} : vector<16x32xf32>, vector<32x32xf32>, vector<16x32xf32> -> vector<16x32xf32>
    %c0_3 = arith.constant 0 : index
    %c0_4 = arith.constant 0 : index
    %3 = vector.load %arg2[%c0_3, %c0_4] : memref<1x32xf32, #tpu.memory_space<vmem>>, vector<1x32xf32>
    %4 = vector.broadcast %3 : vector<1x32xf32> to vector<16x32xf32>
    %5 = arith.addf %2, %4 : vector<16x32xf32>
    %c0_5 = arith.constant 0 : index
    %c0_6 = arith.constant 0 : index
    %6 = vector.load %arg3[%c0_5, %c0_6] : memref<32x32xf32, #tpu.memory_space<vmem>>, vector<32x32xf32>
    %cst_7 = arith.constant dense<0.000000e+00> : vector<16x32xf32>
    %7 = tpu.matmul %0, %6, %cst_7 {dimension_numbers = #tpu.dot_dimension_numbers<[1], [0], [0], [1], [0, 0, 1, 1], [], []>} : vector<16x32xf32>, vector<32x32xf32>, vector<16x32xf32> -> vector<16x32xf32>
    %c0_8 = arith.constant 0 : index
    %c0_9 = arith.constant 0 : index
    %8 = vector.load %arg4[%c0_8, %c0_9] : memref<1x32xf32, #tpu.memory_space<vmem>>, vector<1x32xf32>
    %9 = vector.broadcast %8 : vector<1x32xf32> to vector<16x32xf32>
    %10 = arith.addf %7, %9 : vector<16x32xf32>
    %c0_10 = arith.constant 0 : index
    %c0_11 = arith.constant 0 : index
    %11 = vector.load %arg5[%c0_10, %c0_11] : memref<32x32xf32, #tpu.memory_space<vmem>>, vector<32x32xf32>
    %cst_12 = arith.constant dense<0.000000e+00> : vector<16x32xf32>
    %12 = tpu.matmul %0, %11, %cst_12 {dimension_numbers = #tpu.dot_dimension_numbers<[1], [0], [0], [1], [0, 0, 1, 1], [], []>} : vector<16x32xf32>, vector<32x32xf32>, vector<16x32xf32> -> vector<16x32xf32>
    %c0_13 = arith.constant 0 : index
    %c0_14 = arith.constant 0 : index
    %13 = vector.load %arg6[%c0_13, %c0_14] : memref<1x32xf32, #tpu.memory_space<vmem>>, vector<1x32xf32>
    %14 = vector.broadcast %13 : vector<1x32xf32> to vector<16x32xf32>
    %15 = arith.addf %12, %14 : vector<16x32xf32>
    %c0_15 = arith.constant 0 : index
    %c0_16 = arith.constant 0 : index
    %16 = vector.load %arg14[%c0_15, %c0_16] : memref<16x16xf32, #tpu.memory_space<vmem>>, vector<16x16xf32>
    %c0_17 = arith.constant 0 : index
    %c0_18 = arith.constant 0 : index
    %17 = vector.load %arg11[%c0_17, %c0_18] : memref<32x32xf32, #tpu.memory_space<vmem>>, vector<32x32xf32>
    %cst_19 = arith.constant dense<0.000000e+00> : vector<16x32xf32>
    %18 = tpu.matmul %16, %10, %cst_19 {dimension_numbers = #tpu.dot_dimension_numbers<[1], [0], [0], [1], [0, 0, 1, 1], [], []>} : vector<16x16xf32>, vector<16x32xf32>, vector<16x32xf32> -> vector<16x32xf32>
    %cst_20 = arith.constant dense<0.000000e+00> : vector<16x32xf32>
    %19 = tpu.matmul %18, %17, %cst_20 {dimension_numbers = #tpu.dot_dimension_numbers<[1], [0], [0], [1], [0, 0, 1, 1], [], []>} : vector<16x32xf32>, vector<32x32xf32>, vector<16x32xf32> -> vector<16x32xf32>
    %20 = arith.mulf %5, %19 : vector<16x32xf32>
    %c0_21 = arith.constant 0 : index
    %c0_22 = arith.constant 0 : index
    %21 = vector.load %arg12[%c0_21, %c0_22] : memref<32x4xf32, #tpu.memory_space<vmem>>, vector<32x4xf32>
    %cst_23 = arith.constant dense<0.000000e+00> : vector<16x4xf32>
    %22 = tpu.matmul %20, %21, %cst_23 {dimension_numbers = #tpu.dot_dimension_numbers<[1], [0], [0], [1], [0, 0, 1, 1], [], []>} : vector<16x32xf32>, vector<32x4xf32>, vector<16x4xf32> -> vector<16x4xf32>
    %cst_24 = arith.constant 0.353553385 : f32
    %23 = vector.broadcast %cst_24 : f32 to vector<16x4xf32>
    %24 = arith.mulf %22, %23 : vector<16x4xf32>
    %25 = vector.shape_cast %24 : vector<16x4xf32> to vector<1x16x4xf32>
    %cst_25 = arith.constant dense<0xFF800000> : vector<1xf32>
    %26 = vector.multi_reduction <maximumf>, %25, %cst_25 [1, 2] : vector<1x16x4xf32> to vector<1xf32>
    %27 = vector.shape_cast %26 : vector<1xf32> to vector<1x1x1xf32>
    %28 = vector.extract %27[0, 0, 0] : f32 from vector<1x1x1xf32>
    %29 = vector.broadcast %28 : f32 to vector<1x1xf32>
    %30 = vector.broadcast %29 : vector<1x1xf32> to vector<16x4xf32>
    %31 = arith.subf %24, %30 : vector<16x4xf32>
    %32 = math.exp %31 : vector<16x4xf32>
    %cst_26 = arith.constant dense<0.000000e+00> : vector<16xf32>
    %33 = vector.multi_reduction <add>, %32, %cst_26 [1] : vector<16x4xf32> to vector<16xf32>
    %34 = vector.shape_cast %33 : vector<16xf32> to vector<16x1xf32>
    %cst_27 = arith.constant dense<0.000000e+00> : vector<16x1xf32>
    %35 = tpu.matmul %16, %34, %cst_27 {dimension_numbers = #tpu.dot_dimension_numbers<[1], [0], [0], [1], [0, 0, 1, 1], [], []>} : vector<16x16xf32>, vector<16x1xf32>, vector<16x1xf32> -> vector<16x1xf32>
    %36 = vector.broadcast %35 : vector<16x1xf32> to vector<16x4xf32>
    %37 = arith.divf %32, %36 : vector<16x4xf32>
    %c0_28 = arith.constant 0 : index
    %c0_29 = arith.constant 0 : index
    %38 = vector.load %arg13[%c0_28, %c0_29] : memref<4x32xf32, #tpu.memory_space<vmem>>, vector<4x32xf32>
    %cst_30 = arith.constant dense<0.000000e+00> : vector<16x32xf32>
    %39 = tpu.matmul %37, %38, %cst_30 {dimension_numbers = #tpu.dot_dimension_numbers<[1], [0], [0], [1], [0, 0, 1, 1], [], []>} : vector<16x4xf32>, vector<4x32xf32>, vector<16x32xf32> -> vector<16x32xf32>
    %40 = arith.mulf %39, %15 : vector<16x32xf32>
    %c0_31 = arith.constant 0 : index
    %c0_32 = arith.constant 0 : index
    %41 = vector.load %arg16[%c0_31, %c0_32] : memref<2x16xf32, #tpu.memory_space<vmem>>, vector<2x16xf32>
    %cst_33 = arith.constant dense<0.000000e+00> : vector<16x32xf32>
    %42 = tpu.matmul %40, %17, %cst_33 {dimension_numbers = #tpu.dot_dimension_numbers<[1], [0], [0], [1], [0, 0, 1, 1], [], []>} : vector<16x32xf32>, vector<32x32xf32>, vector<16x32xf32> -> vector<16x32xf32>
    %c0_34 = arith.constant 0 : index
    %c0_35 = arith.constant 0 : index
    %43 = vector.load %arg15[%c0_34, %c0_35] : memref<16x32xf32, #tpu.memory_space<vmem>>, vector<16x32xf32>
    %44 = arith.mulf %42, %43 : vector<16x32xf32>
    %cst_36 = arith.constant dense<0.000000e+00> : vector<2x32xf32>
    %45 = tpu.matmul %41, %44, %cst_36 {dimension_numbers = #tpu.dot_dimension_numbers<[1], [0], [0], [1], [0, 0, 1, 1], [], []>} : vector<2x16xf32>, vector<16x32xf32>, vector<2x32xf32> -> vector<2x32xf32>
    %c0_37 = arith.constant 0 : index
    %c0_38 = arith.constant 0 : index
    %46 = vector.load %arg7[%c0_37, %c0_38] : memref<32x32xf32, #tpu.memory_space<vmem>>, vector<32x32xf32>
    %cst_39 = arith.constant dense<0.000000e+00> : vector<2x32xf32>
    %47 = tpu.matmul %45, %46, %cst_39 {dimension_numbers = #tpu.dot_dimension_numbers<[1], [0], [0], [1], [0, 0, 1, 1], [], []>} : vector<2x32xf32>, vector<32x32xf32>, vector<2x32xf32> -> vector<2x32xf32>
    %c0_40 = arith.constant 0 : index
    %c0_41 = arith.constant 0 : index
    %48 = vector.load %arg8[%c0_40, %c0_41] : memref<1x32xf32, #tpu.memory_space<vmem>>, vector<1x32xf32>
    %49 = vector.broadcast %48 : vector<1x32xf32> to vector<2x32xf32>
    %50 = arith.addf %47, %49 : vector<2x32xf32>
    %cst_42 = arith.constant dense<0.000000e+00> : vector<2xf32>
    %51 = vector.multi_reduction <add>, %50, %cst_42 [1] : vector<2x32xf32> to vector<2xf32>
    %52 = vector.shape_cast %51 : vector<2xf32> to vector<2x1xf32>
    %cst_43 = arith.constant 3.200000e+01 : f32
    %53 = vector.broadcast %cst_43 : f32 to vector<2x1xf32>
    %54 = arith.divf %52, %53 : vector<2x1xf32>
    %55 = vector.broadcast %54 : vector<2x1xf32> to vector<2x32xf32>
    %56 = arith.subf %50, %55 : vector<2x32xf32>
    %57 = arith.mulf %56, %56 : vector<2x32xf32>
    %cst_44 = arith.constant dense<0.000000e+00> : vector<2xf32>
    %58 = vector.multi_reduction <add>, %57, %cst_44 [1] : vector<2x32xf32> to vector<2xf32>
    %59 = vector.shape_cast %58 : vector<2xf32> to vector<2x1xf32>
    %cst_45 = arith.constant 3.200000e+01 : f32
    %60 = vector.broadcast %cst_45 : f32 to vector<2x1xf32>
    %61 = arith.divf %59, %60 : vector<2x1xf32>
    %62 = vector.broadcast %54 : vector<2x1xf32> to vector<2x32xf32>
    %63 = arith.subf %50, %62 : vector<2x32xf32>
    %cst_46 = arith.constant 9.99999974E-6 : f32
    %64 = vector.broadcast %cst_46 : f32 to vector<2x1xf32>
    %65 = arith.addf %61, %64 : vector<2x1xf32>
    %66 = math.rsqrt %65 : vector<2x1xf32>
    %67 = vector.broadcast %66 : vector<2x1xf32> to vector<2x32xf32>
    %68 = arith.mulf %63, %67 : vector<2x32xf32>
    %c0_47 = arith.constant 0 : index
    %c0_48 = arith.constant 0 : index
    %69 = vector.load %arg9[%c0_47, %c0_48] : memref<1x32xf32, #tpu.memory_space<vmem>>, vector<1x32xf32>
    %70 = vector.broadcast %69 : vector<1x32xf32> to vector<2x32xf32>
    %71 = arith.mulf %68, %70 : vector<2x32xf32>
    %c0_49 = arith.constant 0 : index
    %c0_50 = arith.constant 0 : index
    %72 = vector.load %arg10[%c0_49, %c0_50] : memref<1x32xf32, #tpu.memory_space<vmem>>, vector<1x32xf32>
    %73 = vector.broadcast %72 : vector<1x32xf32> to vector<2x32xf32>
    %74 = arith.addf %71, %73 : vector<2x32xf32>
    %c0_51 = arith.constant 0 : index
    %c0_52 = arith.constant 0 : index
    %c0_53 = arith.constant 0 : index
    %75 = vector.load %arg17[%c0_51, %c0_52, %c0_53] : memref<2x1x32xf32, #tpu.memory_space<vmem>>, vector<2x1x32xf32>
    %76 = vector.shape_cast %75 : vector<2x1x32xf32> to vector<2x32xf32>
    %77 = vector.shape_cast %74 : vector<2x32xf32> to vector<2x1x32xf32>
    tpu.vector_store %arg17[%c0_51, %c0_52, %c0_53], %77 {strides = array<i32>} : memref<2x1x32xf32, #tpu.memory_space<vmem>>, vector<2x1x32xf32>,
    return
  }
}

</mosaic_0001>

<bundles_post_ra>
// kernel: multi_head_attention.1
= control target key start
LH: loop header
LB: loop body
LE: loop exit
PB: predicated region body
PF: predicated region fallthrough
CT: control target
= control target key end

     0   :  { %s1306_s0 = inlined_call_operand.hbm [shape: f32[16,32], index: 0, kind: input, shape index: {}]   ;;  %s1307_s1 = inlined_call_operand.hbm [shape: f32[32,32], index: 1, kind: input, shape index: {}]   ;;  %s1308_s2 = inlined_call_operand.vmem [shape: f32[1,32], index: 2, kind: input, shape index: {}]   ;;  %s1309_s3 = inlined_call_operand.hbm [shape: f32[32,32], index: 3, kind: input, shape index: {}]   ;;  %s1310_s4 = inlined_call_operand.hbm [shape: f32[1,32], index: 4, kind: input, shape index: {}]   ;;  %s1311_s5 = inlined_call_operand.hbm [shape: f32[32,32], index: 5, kind: input, shape index: {}]   ;;  %s1312_s6 = inlined_call_operand.hbm [shape: f32[1,32], index: 6, kind: input, shape index: {}]   ;;  %s1313_s7 = inlined_call_operand.hbm [shape: f32[32,32], index: 7, kind: input, shape index: {}]   ;;  %s1314_s8 = inlined_call_operand.vmem [shape: f32[1,32], index: 8, kind: input, shape index: {}]   ;;  %s1315_s9 = inlined_call_operand.vmem [shape: f32[1,32], index: 9, kind: input, shape index: {}]   ;;  %s1316_s10 = inlined_call_operand.vmem [shape: f32[1,32], index: 10, kind: input, shape index: {}]   ;;  %s1317_s11 = inlined_call_operand.hbm [shape: f32[32,32], index: 11, kind: input, shape index: {}]   ;;  %s1318_s12 = inlined_call_operand.hbm [shape: f32[32,4], index: 12, kind: input, shape index: {}]   ;;  %s1319_s13 = inlined_call_operand.vmem [shape: f32[4,32], index: 13, kind: input, shape index: {}]   ;;  %s1320_s14 = inlined_call_operand.hbm [shape: f32[16,16], index: 14, kind: input, shape index: {}]   ;;  %s1321_s15 = inlined_call_operand.hbm [shape: f32[16,32], index: 15, kind: input, shape index: {}]   ;;  %s1322_s16 = inlined_call_operand.vmem [shape: f32[2,16], index: 16, kind: input, shape index: {}]   ;;  %s1323_s17 = inlined_call_operand.hbm [shape: f32[2,1,32], index: 17, kind: output, shape index: {}]  }
   0x1   :  { %1326 = sst [smem:[#allocation28_spill]] %s1306_s0 }
   0x2   :  { %1327 = sst [smem:[#allocation29_spill]] %s1307_s1 }
   0x3   :  { %22 = vsyncpa [#allocation3], 0 }
   0x4   :  { %23 = vsyncpa [#allocation6], 0 }
   0x5   :  { %24 = vsyncpa [#allocation9], 0 }
   0x6   :  { %25 = vsyncpa [#allocation12], 0 }
   0x7   :  { %26 = vsyncpa [#allocation15], 0 }
   0x8   :  { %27 = vsyncpa [#allocation18], 0 }
   0x9   :  { %28 = vsyncpa [#allocation4], 0  ;;  %s1328_s26 = sld [smem:[#allocation29_spill]]  ;;  %s1077_s28 = smov [#allocation5]  }
   0xa   :  { %s48_s29 = sshll.u32 %s1077_s28, 4  ;;  %s75_s18 = sshll.u32 %s1310_s4, 4  ;;  %s49_s29 = int_to_ptr.vmem [resolvable:$true] %s48_s29  ;;  %s76_s18 = int_to_ptr.hbm [resolvable:$true] %s75_s18 }
   0xb   :  { %s1324_s19 = smov 128   ;;  %s1079_s1 = smov 8  }
   0xc   :  { %s1080_s20 = smov [#allocation8]   ;;  %s99_s24 = sshll.u32 %s1312_s6, 4  ;;  %s100_s24 = int_to_ptr.hbm [resolvable:$true] %s99_s24 }
   0xd   :  { %s77_s21 = sshll.u32 %s1080_s20, 4  ;;  %s128_s4 = sshll.u32 %s1317_s11, 4  ;;  %s78_s21 = int_to_ptr.vmem [resolvable:$true] %s77_s21  ;;  %s129_s4 = int_to_ptr.hbm [resolvable:$true] %s128_s4 }
   0xe   :  { %80 = dma.hbm_to_vmem [thread:$0]  %s76_s18, 16, %s78_s21, [#allocation9]  }
   0xf   :  { %s46_s27 = sshll.u32 %s1328_s26, 4  ;;  %s1081_s28 = smov [#allocation11]   ;;  %s47_s27 = int_to_ptr.hbm [resolvable:$true] %s46_s27 }
  0x10   :  { %54 = dma.hbm_to_vmem [thread:$0]  %s47_s27, 512, %s49_s29, [#allocation6], %s1324_s19, %s1324_s19, %s1079_s1  }
  0x11   :  { %s101_s0 = sshll.u32 %s1081_s28, 4  ;;  %s1082_s27 = smov [#allocation14]   ;;  %s102_s0 = int_to_ptr.vmem [resolvable:$true] %s101_s0 }
  0x12   :  { %104 = dma.hbm_to_vmem [thread:$0]  %s100_s24, 16, %s102_s0, [#allocation12]  }
  0x13   :  { %s130_s29 = sshll.u32 %s1082_s27, 4  ;;  %s156_s19 = sshll.u32 %s1320_s14, 4  ;;  %s131_s29 = int_to_ptr.vmem [resolvable:$true] %s130_s29  ;;  %s157_s19 = int_to_ptr.hbm [resolvable:$true] %s156_s19 }
  0x14   :  { %s1329_s6 = smov 128   ;;  %s1330_s11 = sld [smem:[#allocation28_spill]] }
  0x15   :  { %136 = dma.hbm_to_vmem [thread:$0]  %s129_s4, 512, %s131_s29, [#allocation15], %s1329_s6, %s1329_s6, %s1079_s1  }
  0x16   :  { %s1083_s23 = smov [#allocation17]   ;;  %s1084_s24 = smov [#allocation2]  }
  0x17   :  { %s158_s25 = sshll.u32 %s1083_s23, 4  ;;  %s35_s14 = sshll.u32 %s1084_s24, 4  ;;  %s159_s25 = int_to_ptr.vmem [resolvable:$true] %s158_s25  ;;  %s36_s14 = int_to_ptr.vmem [resolvable:$true] %s35_s14 }
  0x18   :  { %164 = dma.hbm_to_vmem [thread:$0]  %s157_s19, 256, %s159_s25, [#allocation18], %s1329_s6, %s1329_s6, %s1079_s1  }
  0x19   :  { %s61_s0 = sshll.u32 %s1309_s3, 4  ;;  %s85_s29 = sshll.u32 %s1311_s5, 4  ;;  %s62_s0 = int_to_ptr.hbm [resolvable:$true] %s61_s0  ;;  %s86_s29 = int_to_ptr.hbm [resolvable:$true] %s85_s29 }
  0x1a   :  { %s33_s22 = sshll.u32 %s1330_s11, 4  ;;  %s1085_s30 = smov [#allocation7]   ;;  %s34_s22 = int_to_ptr.hbm [resolvable:$true] %s33_s22 }
  0x1b   :  { %41 = dma.hbm_to_vmem [thread:$0]  %s34_s22, 256, %s36_s14, [#allocation3], %s1329_s6, %s1329_s6, %s1079_s1  }
  0x1c   :  { %s63_s20 = sshll.u32 %s1085_s30, 4  ;;  %s1086_s19 = smov [#allocation10]   ;;  %s64_s20 = int_to_ptr.vmem [resolvable:$true] %s63_s20 }
  0x1d   :  { %69 = dma.hbm_to_vmem [thread:$0]  %s62_s0, 512, %s64_s20, [#allocation6], %s1329_s6, %s1329_s6, %s1079_s1  }
  0x1e   :  { %s87_s3 = sshll.u32 %s1086_s19, 4  ;;  %s109_s11 = sshll.u32 %s1313_s7, 4  ;;  %s88_s3 = int_to_ptr.vmem [resolvable:$true] %s87_s3  ;;  %s110_s11 = int_to_ptr.hbm [resolvable:$true] %s109_s11 }
  0x1f   :  { %93 = dma.hbm_to_vmem [thread:$0]  %s86_s29, 512, %s88_s3, [#allocation9], %s1329_s6, %s1329_s6, %s1079_s1  }
  0x20   :  { %s141_s23 = sshll.u32 %s1318_s12, 4  ;;  %s1087_s25 = smov [#allocation13]   ;;  %s142_s23 = int_to_ptr.hbm [resolvable:$true] %s141_s23 }
  0x21   :  { %s111_s24 = sshll.u32 %s1087_s25, 4  ;;  %s1088_s14 = smov [#allocation16]   ;;  %s112_s24 = int_to_ptr.vmem [resolvable:$true] %s111_s24 }
  0x22   :  { %117 = dma.hbm_to_vmem [thread:$0]  %s110_s11, 512, %s112_s24, [#allocation12], %s1329_s6, %s1329_s6, %s1079_s1  }
  0x23   :  { %s143_s7 = sshll.u32 %s1088_s14, 4  ;;  %s169_s0 = sshll.u32 %s1321_s15, 4  ;;  %s144_s7 = int_to_ptr.vmem [resolvable:$true] %s143_s7  ;;  %s170_s0 = int_to_ptr.hbm [resolvable:$true] %s169_s0 }
  0x24   :  { %149 = dma.hbm_to_vmem [thread:$0]  %s142_s23, 512, %s144_s7, [#allocation15], %s1329_s6, %s1329_s6, %s1079_s1  }
  0x25   :  { %s1089_s12 = smov [#allocation19]  }
  0x26   :  { %s171_s4 = sshll.u32 %s1089_s12, 4  ;;  %s172_s4 = int_to_ptr.vmem [resolvable:$true] %s171_s4 }
  0x27   :  { %177 = dma.hbm_to_vmem [thread:$0]  %s170_s0, 256, %s172_s4, [#allocation18], %s1329_s6, %s1329_s6, %s1079_s1  }
  0x28   :  { %1063 = dma.done.wait [#allocation3], 256  }
  0x29   :  { %1064 = vsyncadd [#allocation3], 4294967040 }
  0x2a   :  { %1065 = dma.done.wait [#allocation6], 1024  }
  0x2b   :  { %1066 = vsyncadd [#allocation6], 4294966272 }
  0x2c   :  { %1067 = dma.done.wait [#allocation9], 528  }
  0x2d   :  { %1068 = vsyncadd [#allocation9], 4294966768 }
  0x2e   :  { %1069 = dma.done.wait [#allocation12], 528  }
  0x2f   :  { %1070 = vsyncadd [#allocation12], 4294966768 }
  0x30   :  { %1071 = dma.done.wait [#allocation15], 1024  }
  0x31   :  { %1072 = vsyncadd [#allocation15], 4294966272 }
  0x32   :  { %1073 = dma.done.wait [#allocation18], 512  }
  0x33   :  { %1074 = vsyncadd [#allocation18], 4294966784  ;;  %v267_v0 = vld [vmem:[#allocation7 + $0x18] sm:$0xff]  ;;  %v266_v1 = vld [vmem:[#allocation7 + $0x10] sm:$0xff]  ;;  %vm234_vm0 = vcmask 261120   ;;  %vm332_vm1 = vcmask 130048  }
  0x34   :  { %284 = vmatpush.msra.mxu1 %v267_v0  ;;  %v265_v2 = vld [vmem:[#allocation7 + $0x8] sm:$0xff]  ;;  %v298_v3 = vld [vmem:[#allocation10 + $0x18] sm:$0xff]  ;;  %v297_v4 = vld [vmem:[#allocation10 + $0x10] sm:$0xff]  ;;  %vm428_vm2 = vcmask 31744   ;;  %vm524_vm3 = vcmask 1043456   ;;  %vm641_vm12 = vcmask 254976  }
  0x35   :  { %v264_v5 = vld [vmem:[#allocation7] sm:$0xff]  ;;  %315 = vmatpush.msra.mxu2 %v298_v3  ;;  %v296_v6 = vld [vmem:[#allocation10 + $0x8] sm:$0xff]  ;;  %v225_v9 = vld [vmem:[#allocation2 + $0x8] sm:$0xff]  ;;  %s1092_s18 = smov [#allocation20]   ;;  %s693_s22 = sshll.u32 %s1323_s17, 4  ;;  %s694_s22 = int_to_ptr.hbm [resolvable:$true] %s693_s22 }
  0x36   :  { %285 = vmatpush.msra.mxu1 %v266_v1  ;;  %v224_v7 = vld [vmem:[#allocation2] sm:$0xff]  ;;  %v295_v8 = vld [vmem:[#allocation10] sm:$0xff]  ;;  %v229_v10 = vld [vmem:[#allocation5 + $0x18] sm:$0xff]  ;;  %v1090_v1 = vmov 0   ;;  %s691_s21 = sshll.u32 %s1092_s18, 4  ;;  %s1094_s23 = smov 1   ;;  %s692_s21 = int_to_ptr.vmem [resolvable:$true] %s691_s21 }
  0x37   :  { %316 = vmatpush.msra.mxu2 %v297_v4  ;;  %253 = vmatpush.msra.mxu0 %v229_v10  ;;  %v228_v11 = vld [vmem:[#allocation5 + $0x10] sm:$0xff]  ;;  %v757_v13 = vld [vmem:[#allocation8] ss:$0 sm:$0xff]  ;;  %v1249_v17 = vld [vmem:[#allocation17] sm:$0xff] }
  0x38   :  { %286 = vmatpush.msra.mxu1 %v265_v2  ;;  %v1251_v18 = vld [vmem:[#allocation17 + $0x8] sm:$0xff]  ;;  %v331_v19 = vld [vmem:[#allocation14 + $0x18] sm:$0xff]  ;;  %v330_v20 = vld [vmem:[#allocation14 + $0x10] sm:$0xff]  ;;  %754 = vset.pattern.permute.xlu1 %v1090_v1 }
  0x39   :  { %317 = vmatpush.msra.mxu2 %v296_v6  ;;  %254 = vmatpush.msra.mxu0 %v228_v11  ;;  %v329_v21 = vld [vmem:[#allocation14 + $0x8] sm:$0xff]  ;;  %v328_v22 = vld [vmem:[#allocation14] sm:$0xff]  ;;  %v396_v25 = vld [vmem:[#allocation16 + $0x18] sm:$0xff] }
  0x3a   :  { %287 = vmatpush.msra.mxu1 %v264_v5  ;;  %v227_v23 = vld [vmem:[#allocation5 + $0x8] sm:$0xff]  ;;  %v226_v24 = vld [vmem:[#allocation5] sm:$0xff]  ;;  %v395_v30 = vld [vmem:[#allocation16 + $0x10] sm:$0xff]  ;;  %755 = vset.pattern.permute.xlu2 %v1090_v1 }
  0x3b   :  { %713 = vmatmul.msk.f32.vlgmr.msra.gmra.mxu1 %vm234_vm0, %v224_v7  ;;  %318 = vmatpush.msra.mxu2 %v295_v8  ;;  %v394_v31 = vld [vmem:[#allocation16 + $0x8] sm:$0xff]  ;;  %v393_v32 = vld [vmem:[#allocation16] sm:$0xff] }
  0x3c   :  { %715 = vmatmul.msk.f32.vlgmr.msra.gmra.mxu2 %vm234_vm0, %v224_v7  ;;  %255 = vmatpush.msra.mxu0 %v227_v23  ;;  %v759_v34 = vld [vmem:[%s1308_s2] ss:$0 sm:$0xff] }
  0x3d   :  { %756 = vset.pattern.permute.xlu0 %v1090_v1  ;;  %v517_v6 = vld [vmem:[%s1319_s13] sm:$0xf] }
  0x3e   :  { %256 = vmatpush.msra.mxu0 %v226_v24 }
  0x3f   :  { %711 = vmatmul.msk.f32.vlgmr.msra.gmra.mxu0 %vm234_vm0, %v224_v7 }
  0x40   :  { %415 = vmatpush.msrb.mxu0 %v396_v25 }
  0x42   :  { %416 = vmatpush.msrb.mxu0 %v395_v30 }
  0x43   :  { %714 = vmatmul.msk.f32.gmra.mxu1 %vm234_vm0, %v225_v9 }
  0x44   :  { %716 = vmatmul.msk.f32.gmra.mxu2 %vm234_vm0, %v225_v9  ;;  %417 = vmatpush.msrb.mxu0 %v394_v31 }
  0x46   :  { %418 = vmatpush.msrb.mxu0 %v393_v32 }
  0x47   :  { %712 = vmatmul.msk.f32.gmra.mxu0 %vm234_vm0, %v225_v9 }
  0xb8   :  { %v289_v12 = vpop.f32.mrf.mxu1 }
  0xb9   :  { %v290_v16 = vadd.f32 %v757_v13, %v289_v12 }
  0xbc   :  { %v258_v33 = vpop.f32.mrf.mxu0 }
  0xbd   :  { %v259_v35 = vadd.f32 %v759_v34, %v258_v33  ;;  %v758_v33 = vld [vmem:[#allocation11] ss:$0 sm:$0xff] }
  0xbf   :  { %v1258_v26 = vpop.f32.mrf.mxu2 }
  0xc0   :  { %v292_v14 = vpop.f32.mrf.mxu1 }
  0xc1   :  { %v293_v15 = vadd.f32 %v757_v13, %v292_v14 }
  0xc3   :  { %353 = vmatpush.msrb.mxu2 %v293_v15  ;;  %732 = vmatpush.msra.mxu3 %v293_v15 }
  0xc4   :  { %v261_v38 = vpop.f32.mrf.mxu0 }
  0xc5   :  { %354 = vmatpush.msrb.mxu2 %v290_v16  ;;  %733 = vmatpush.msra.mxu3 %v290_v16  ;;  %v262_v39 = vadd.f32 %v759_v34, %v261_v38  ;;  %v321_v34 = vadd.f32 %v758_v33, %v1258_v26 }
  0xc6   :  { %717 = vmatmul.msk.f32.vlgmr.msrb.gmra.mxu2 %vm332_vm1, %v1249_v17  ;;  %718 = vmatmul.msk.f32.vlgmr.msra.gmra.mxu3 %vm332_vm1, %v1251_v18 }
  0xc7   :  { %380 = vmatpush.msrb.mxu3 %v331_v19  ;;  %v1261_v27 = vpop.f32.mrf.mxu2  ;;  %725 = vmatpush.msk.msra.mxu2 %vm524_vm3, %v517_v6 }
  0xc9   :  { %381 = vmatpush.msrb.mxu3 %v330_v20 }
  0xcb   :  { %382 = vmatpush.msrb.mxu3 %v329_v21 }
  0xcd   :  { %383 = vmatpush.msrb.mxu3 %v328_v22 }
  0xcf   :  { %572 = vmatpush.msra.mxu3 %v331_v19 }
  0xd1   :  { %573 = vmatpush.msra.mxu3 %v330_v20 }
  0xd3   :  { %574 = vmatpush.msra.mxu3 %v329_v21 }
  0xd5   :  { %575 = vmatpush.msra.mxu3 %v328_v22 }
 0x149   :  { %v356_v28 = vpop.f32.mrf.mxu2  ;;  %v359_v29 = vpop.f32.mrf.mxu3 }
 0x14a   :  { %719 = vmatmul.msk.f32.vlgmr.msrb.gmra.mxu3 %vm234_vm0, %v356_v28 }
 0x152   :  { %720 = vmatmul.msk.f32.gmra.mxu3 %vm234_vm0, %v359_v29 }
 0x1cd   :  { %v385_v36 = vpop.f32.mrf.mxu3 }
 0x1ce   :  { %v391_v37 = vmul.f32 %v385_v36, %v259_v35 }
 0x1d0   :  { %721 = vmatmul.msk.f32.vlgmr.msrb.gmra.mxu0 %vm234_vm0, %v391_v37  ;;  %v324_v37 = vadd.f32 %v758_v33, %v1261_v27  ;;  %v553_v27 = vld [vmem:[%s1322_s16] sm:$0x3] }
 0x1d5   :  { %v388_v40 = vpop.f32.mrf.mxu3 }
 0x1d6   :  { %v392_v41 = vmul.f32 %v388_v40, %v262_v39  ;;  %v613_v40 = vld [vmem:[#allocation13 + $0x18] sm:$0xff] }
 0x1d8   :  { %722 = vmatmul.msk.f32.gmra.mxu0 %vm234_vm0, %v392_v41  ;;  %v612_v41 = vld [vmem:[#allocation13 + $0x10] sm:$0xff] }
 0x24d   :  { %v420_v42 = vpop.f32.mrf.mxu0 }
 0x24e   :  { %v426_v43 = vmul.f32 0.35355338, %v420_v42  ;;  %v611_v42 = vld [vmem:[#allocation13 + $0x8] sm:$0xff] }
 0x250   :  { %v429_v46 = vsel %vm428_vm2, %v426_v43, -inf }
 0x255   :  { %v423_v44 = vpop.f32.mrf.mxu0 }
 0x256   :  { %v427_v45 = vmul.f32 0.35355338, %v423_v44  ;;  %v584_v44 = vld [vmem:[#allocation19 + $0x8] sm:$0xff] }
 0x258   :  { %v430_v47 = vsel %vm428_vm2, %v427_v45, -inf }
 0x259   :  { %v431_v48 = vmax.f32 %v429_v46, %v430_v47 }
 0x25b   :  { %432 = vmax.xlane.f32.xlu0 %v431_v48  ;;  %v610_v48 = vld [vmem:[#allocation13] sm:$0xff] }
 0x2ce   :  { %v433_v49 = vpop.xlane.xlu0 %432 }
 0x2cf   :  { %v434_v50 = vrot.slane %v433_v49, 4 }
 0x2d1   :  { %v435_v51 = vmax.f32 %v433_v49, %v434_v50  ;;  %v760_v50 = vld [vmem:[%s1314_s8] ss:$0 sm:$0xff] }
 0x2d3   :  { %v436_v52 = vrot.slane %v435_v51, 2 }
 0x2d5   :  { %v437_v53 = vmax.f32 %v435_v51, %v436_v52 }
 0x2d7   :  { %v438_v54 = vrot.slane %v437_v53, 1 }
 0x2d9   :  { %v439_v55 = vmax.f32 %v437_v53, %v438_v54  ;;  %v1091_v54 = vmov 32.0  }
 0x2db   :  { %734 = vpush %v439_v55 }
 0x30c   :  { %s735_s2 = spop %734 }
 0x30d   :  { %v441_v56 = vstv %s735_s2 }
 0x30e   :  { %v442_v57 = vsub.f32 %v426_v43, %v441_v56  ;;  %v443_v58 = vsub.f32 %v427_v45, %v441_v56  ;;  %v583_v45 = vld [vmem:[#allocation19] sm:$0xff] }
 0x310   :  { %v444_v59 = vmul.f32 1.442695, %v442_v57  ;;  %v446_v60 = vmul.f32 1.442695, %v443_v58 }
 0x312   :  { %763 = vpow2.f32 %v444_v59 }
 0x313   :  { %765 = vpow2.f32 %v446_v60 }
 0x318   :  { %v764_v61 = vpop.eup %763 }
 0x319   :  { %v766_v62 = vpop.eup %765  ;;  %v448_v63 = vsel %vm428_vm2, %v764_v61, 0.0 }
 0x31a   :  { %v451_v0 = vsel %vm428_vm2, %v766_v62, 0.0  ;;  %449 = vadd.xlane.f32.xlu1 %v448_v63 }
 0x31b   :  { %452 = vadd.xlane.f32.xlu0 %v451_v0 }
 0x38d   :  { %v450_v3 = vpop.xlane.xlu1 %449 }
 0x38e   :  { %v453_v2 = vpop.xlane.xlu0 %452 }
 0x38f   :  { %468 = vmatpush.msrb.mxu1 %v453_v2 }
 0x391   :  { %469 = vmatpush.msrb.mxu1 %v450_v3 }
 0x392   :  { %723 = vmatmul.msk.f32.vlgmr.msrb.gmra.mxu1 %vm332_vm1, %v1249_v17 }
 0x393   :  { %633 = vmatpush.msra.mxu1 %v613_v40 }
 0x395   :  { %634 = vmatpush.msra.mxu1 %v612_v41 }
 0x397   :  { %635 = vmatpush.msra.mxu1 %v611_v42 }
 0x399   :  { %636 = vmatpush.msra.mxu1 %v610_v48 }
 0x39a   :  { %724 = vmatmul.msk.f32.gmra.mxu1 %vm332_vm1, %v1251_v18 }
 0x40f   :  { %v471_v4 = vpop.f32.mrf.mxu1 }
 0x410   :  { %479 = vperm.xlu1 %754, %v471_v4  }
 0x417   :  { %v474_v5 = vpop.f32.mrf.mxu1 }
 0x418   :  { %484 = vperm.xlu2 %755, %v474_v5  }
 0x472   :  { %v485_v7 = vpop.permute.xlu2 %484 }
 0x473   :  { %767 = vrcp.f32 %v485_v7  ;;  %vm507_vm5 = vweird.f32 %v485_v7  ;;  %v513_v20 = vand.u32 2147483648, %v485_v7  ;;  %v511_v24 = vand.u32 2147483647, %v485_v7 }
 0x475   :  { %v514_v29 = vor.u32 1.1754944e-38, %v513_v20  ;;  %vm512_vm11 = vcmp.eq.f32.partialorder %v511_v24, 8.507059e+37 }
 0x479   :  { %v768_v9 = vpop.eup %767 }
 0x47a   :  { %v503_v10 = vmul.f32 %v768_v9, %v485_v7  ;;  %vm508_vm7 = vweird.f32 %v768_v9 }
 0x47b   :  { %vm509_vm10 = vmor %vm507_vm5, %vm508_vm7 }
 0x47c   :  { %v504_v12 = vsub.f32 1.0, %v503_v10 }
 0x47e   :  { %v505_v16 = vmul.f32 %v768_v9, %v504_v12 }
 0x480   :  { %v506_v23 = vadd.f32 %v768_v9, %v505_v16 }
 0x482   :  { %v480_v8 = vpop.permute.xlu1 %479  ;;  %v510_v30 = vsel %vm509_vm10, %v768_v9, %v506_v23 }
 0x483   :  { %769 = vrcp.f32 %v480_v8  ;;  %v498_v15 = vand.u32 2147483648, %v480_v8  ;;  %v496_v18 = vand.u32 2147483647, %v480_v8  ;;  %vm492_vm6 = vweird.f32 %v480_v8 }
 0x484   :  { %v515_v31 = vsel %vm512_vm11, %v514_v29, %v510_v30  ;;  %771 = vrcp.f32 %v1091_v54 }
 0x485   :  { %v499_v21 = vor.u32 1.1754944e-38, %v498_v15  ;;  %vm497_vm9 = vcmp.eq.f32.partialorder %v496_v18, 8.507059e+37  ;;  %v516_v32 = vmul.f32 %v766_v62, %v515_v31 }
 0x489   :  { %v770_v11 = vpop.eup %769 }
 0x48a   :  { %v488_v13 = vmul.f32 %v770_v11, %v480_v8  ;;  %vm493_vm4 = vweird.f32 %v770_v11  ;;  %v772_v55 = vpop.eup %771 }
 0x48b   :  { %vm494_vm8 = vmor %vm492_vm6, %vm493_vm4  ;;  %v646_v56 = vmul.f32 32.0, %v772_v55  ;;  %vm650_vm13 = vweird.f32 %v772_v55 }
 0x48c   :  { %v489_v14 = vsub.f32 1.0, %v488_v13  ;;  %v762_v13 = vld [vmem:[%s1316_s10] ss:$0 sm:$0xff] }
 0x48d   :  { %v647_v57 = vsub.f32 1.0, %v646_v56 }
 0x48e   :  { %v490_v17 = vmul.f32 %v770_v11, %v489_v14 }
 0x48f   :  { %v648_v58 = vmul.f32 %v772_v55, %v647_v57 }
 0x490   :  { %v491_v19 = vadd.f32 %v770_v11, %v490_v17 }
 0x491   :  { %v649_v59 = vadd.f32 %v772_v55, %v648_v58 }
 0x492   :  { %v495_v22 = vsel %vm494_vm8, %v770_v11, %v491_v19  ;;  %v761_v11 = vld [vmem:[%s1315_s9] ss:$0 sm:$0xff]  ;;  %s1093_s9 = smov 16  }
 0x493   :  { %v500_v25 = vsel %vm497_vm9, %v499_v21, %v495_v22  ;;  %v651_v60 = vsel %vm650_vm13, %v772_v55, %v649_v59 }
 0x494   :  { %v501_v28 = vmul.f32 %v764_v61, %v500_v25 }
 0x496   :  { %726 = vmatmul.msk.f32.vlgmr.msra.gmra.mxu2 %vm428_vm2, %v501_v28 }
 0x49e   :  { %727 = vmatmul.msk.f32.gmra.mxu2 %vm428_vm2, %v516_v32 }
 0x519   :  { %v545_v35 = vpop.f32.mrf.mxu2 }
 0x51a   :  { %v551_v36 = vmul.f32 %v545_v35, %v321_v34 }
 0x51c   :  { %728 = vmatmul.msk.f32.vlgmr.msra.gmra.mxu3 %vm234_vm0, %v551_v36 }
 0x521   :  { %v548_v38 = vpop.f32.mrf.mxu2 }
 0x522   :  { %v552_v39 = vmul.f32 %v548_v38, %v324_v37 }
 0x524   :  { %729 = vmatmul.msk.f32.gmra.mxu3 %vm234_vm0, %v552_v39 }
 0x59f   :  { %v577_v43 = vpop.f32.mrf.mxu3 }
 0x5a0   :  { %v585_v47 = vmul.f32 %v583_v45, %v577_v43 }
 0x5a7   :  { %v580_v26 = vpop.f32.mrf.mxu3 }
 0x5a8   :  { %v586_v46 = vmul.f32 %v584_v44, %v580_v26 }
 0x5aa   :  { %604 = vmatpush.msra.mxu0 %v586_v46 }
 0x5ac   :  { %605 = vmatpush.msra.mxu0 %v585_v47 }
 0x5ad   :  { %730 = vmatmul.msk.f32.vlgmr.msra.gmra.mxu0 %vm332_vm1, %v553_v27  ;;  %vm684_vm1 = vcmask 253952  }
 0x62a   :  { %v607_v49 = vpop.f32.mrf.mxu0 }
 0x62b   :  { %731 = vmatmul.msk.f32.vlgmr.msra.gmra.mxu1 %vm234_vm0, %v607_v49 }
 0x6a8   :  { %v638_v51 = vpop.f32.mrf.mxu1 }
 0x6a9   :  { %v639_v52 = vadd.f32 %v760_v50, %v638_v51 }
 0x6ab   :  { %v642_v53 = vsel %vm641_vm12, %v639_v52, 0.0 }
 0x6ac   :  { %643 = vadd.xlane.f32.xlu2 %v642_v53 }
 0x71f   :  { %v644_v61 = vpop.xlane.xlu2 %643 }
 0x720   :  { %v652_v62 = vmul.f32 %v651_v60, %v644_v61 }
 0x722   :  { %v653_v63 = vsub.f32 %v639_v52, %v652_v62 }
 0x724   :  { %v654_v0 = vmul.f32 %v653_v63, %v653_v63 }
 0x726   :  { %v655_v1 = vsel %vm641_vm12, %v654_v0, 0.0 }
 0x727   :  { %656 = vadd.xlane.f32.xlu0 %v655_v1 }
 0x79a   :  { %v657_v2 = vpop.xlane.xlu0 %656 }
 0x79b   :  { %v658_v3 = vmul.f32 %v657_v2, %v651_v60 }
 0x79d   :  { %v659_v4 = vadd.f32 1e-05, %v658_v3 }
 0x79f   :  { %773 = vrsqrt.f32 %v659_v4  ;;  %vm666_vm15 = vweird.f32 %v659_v4 }
 0x7a5   :  { %v774_v5 = vpop.eup %773 }
 0x7a6   :  { %v661_v6 = vmul.f32 %v774_v5, %v659_v4  ;;  %vm667_vm14 = vweird.f32 %v774_v5 }
 0x7a7   :  { %vm668_vm0 = vmor %vm666_vm15, %vm667_vm14 }
 0x7a8   :  { %v662_v7 = vmul.f32 %v774_v5, %v661_v6 }
 0x7aa   :  { %v663_v8 = vmul.f32 0.5, %v662_v7 }
 0x7ac   :  { %v664_v9 = vsub.f32 1.5, %v663_v8 }
 0x7ae   :  { %v665_v10 = vmul.f32 %v774_v5, %v664_v9 }
 0x7b0   :  { %v669_v12 = vsel %vm668_vm0, %v774_v5, %v665_v10 }
 0x7b1   :  { %v670_v14 = vmul.f32 %v669_v12, %v653_v63 }
 0x7b3   :  { %v675_v15 = vmul.f32 %v761_v11, %v670_v14 }
 0x7b5   :  { %v680_v16 = vadd.f32 %v762_v13, %v675_v15 }
 0x7b7   :  { %v682_v17 = vrot.slane %v680_v16, 1  ;;  %685 = vst.msk [vmem:[#allocation20] sm:$0x1] %vm684_vm1, %v680_v16 }
 0x7b9   :  { %686 = vst.msk [vmem:[#allocation20 + $0x1] sm:$0x1] %vm684_vm1, %v682_v17 }
 0x7ba   :  { %699 = dma.vmem_to_hbm [thread:$0]  %s692_s21, 32, %s694_s22, [#allocation4], %s1093_s9, %s1093_s9, %s1094_s23  }
 0x7bb   :  { %1075 = dma.done.wait [#allocation4], 32  }
 0x7bc   :  { %1076 = vsyncadd [#allocation4], 4294967264 }
 0x7bd   :  { %704 = vsyncpa [#allocation3], 1 }
 0x7be   :  { %705 = vsyncpa [#allocation6], 1 }
 0x7bf   :  { %706 = vsyncpa [#allocation9], 1 }
 0x7c0   :  { %707 = vsyncpa [#allocation12], 1 }
 0x7c1   :  { %708 = vsyncpa [#allocation15], 1 }
 0x7c2   :  { %709 = vsyncpa [#allocation18], 1 }
 0x7c3   :  { %710 = vsyncpa [#allocation4], 1 }

</bundles_post_ra>
